<compile_context>
chip_gen: v5e
topology: v5e:2x2
jax: 0.10.0
libtpu: 0.0.40
codegen_flags: <defaults>
</compile_context>

<pallas_src>
import jax
import jax.numpy as jnp
from jax.experimental import pallas as pl
from jax.experimental.pallas import tpu as pltpu


def _round_up(n, m):
    return ((n + m - 1) // m) * m


# --------------------------------------------------------------------------
# Kernel: one MXU matmul (bias already folded into the weight slab).
# --------------------------------------------------------------------------
def affine_kernel(x_ref, w_ref, o_ref):
    o_ref[...] = jnp.dot(
        x_ref[...], w_ref[...], preferred_element_type=jnp.float32
    ).astype(o_ref.dtype)


# --------------------------------------------------------------------------
# Parameter folding / packing (pure JAX, outside the kernel).
# --------------------------------------------------------------------------
def fold_affine(params):
    """Collapse the activation-free 3-layer MLP into a single affine map."""
    w1, b1, w2, b2, w3, b3 = params
    w_eff = w1 @ w2 @ w3                      # (in, out)
    b_eff = b1 @ w2 @ w3 + b2 @ w3 + b3       # (1, out)
    return w_eff, b_eff


def prepare_affine_inputs(x, params, *, block_rows=512):
    """Fold params, fold the bias in via a ones column, zero-pad to
    TPU-friendly (8-sublane, 128-lane) multiples, and pick the batch tile."""
    w_eff, b_eff = fold_affine(params)
    in_f, out_f = w_eff.shape
    batch = x.shape[0]

    k_pad = _round_up(in_f + 1, 128)          # +1 row carries the bias
    n_pad = _round_up(out_f, 128)             # lane-dense output
    m_pad = _round_up(batch, 8)
    tm = min(block_rows, m_pad)
    m_pad = _round_up(m_pad, tm)

    # Weight slab: rows [0:in_f] = W_eff, row in_f = b_eff, rest zeros.
    slab = jnp.zeros((k_pad, n_pad), x.dtype)
    slab = slab.at[:in_f, :out_f].set(w_eff.astype(x.dtype))
    slab = slab.at[in_f, :out_f].set(b_eff.reshape(-1).astype(x.dtype))

    # Augmented input: [x | 1 | 0-pad]; padding rows stay all-zero.
    x_aug = jnp.zeros((m_pad, k_pad), x.dtype)
    x_aug = x_aug.at[:batch, :in_f].set(x)
    x_aug = x_aug.at[:batch, in_f].set(1.0)
    return x_aug, slab, tm, batch, out_f


# --------------------------------------------------------------------------
# pallas_call wrapper.
# --------------------------------------------------------------------------
def affine_pallas(x_aug, slab, tm):
    m_pad, k_pad = x_aug.shape
    _, n_pad = slab.shape
    grid = (m_pad // tm,)
    return pl.pallas_call(
        affine_kernel,
        out_shape=jax.ShapeDtypeStruct((m_pad, n_pad), x_aug.dtype),
        grid=grid,
        in_specs=[
            pl.BlockSpec((tm, k_pad), lambda i: (i, 0)),     # x rows, pipelined
            pl.BlockSpec((k_pad, n_pad), lambda i: (0, 0)),  # weights, resident
        ],
        out_specs=pl.BlockSpec((tm, n_pad), lambda i: (i, 0)),
        compiler_params=pltpu.CompilerParams(
            dimension_semantics=("parallel",)),
    )(x_aug, slab)


def blob_model_forward(x, params, *, block_rows=512):
    """Forward pass of BlobModel: Linear -> Linear -> Linear (no activations)."""
    x_aug, slab, tm, batch, out_f = prepare_affine_inputs(
        x, params, block_rows=block_rows)
    out_padded = affine_pallas(x_aug, slab, tm)
    return out_padded[:batch, :out_f]


# --------------------------------------------------------------------------
# PyTorch-like parameter init: U(-1/sqrt(fan_in), 1/sqrt(fan_in)).
# Weights are stored pre-transposed as (in, out); biases as (1, out).
# --------------------------------------------------------------------------
def init_params(key, input_features, output_features, hidden_units=8,
                dtype=jnp.float32):
    dims = [(input_features, hidden_units),
            (hidden_units, hidden_units),
            (hidden_units, output_features)]
    params = []
    for fan_in, fan_out in dims:
        key, kw, kb = jax.random.split(key, 3)
        bound = 1.0 / (fan_in ** 0.5)
        w = jax.random.uniform(kw, (fan_in, fan_out), dtype, -bound, bound)
        b = jax.random.uniform(kb, (1, fan_out), dtype, -bound, bound)
        params += [w, b]
    return tuple(params)


if __name__ == "__main__":
    INPUT_FEATURES = 4
    OUTPUT_FEATURES = 4
    HIDDEN_UNITS = 8
    BATCH = 8

    key = jax.random.PRNGKey(0)
    key, kx = jax.random.split(key)
    x = jax.random.normal(kx, (BATCH, INPUT_FEATURES), jnp.float32)
    params = init_params(key, INPUT_FEATURES, OUTPUT_FEATURES, HIDDEN_UNITS)

    out = blob_model_forward(x, params)
    jax.block_until_ready(out)
    assert out.shape == (BATCH, OUTPUT_FEATURES)

    # (1) Structural check: kernel vs. the identical padded affine map in plain
    #     JAX (same operands, same op order) -- tight tolerance.
    x_aug, slab, _, _, _ = prepare_affine_inputs(x, params)
    ref_struct = (x_aug @ slab)[:BATCH, :OUTPUT_FEATURES]
    assert jnp.allclose(out, ref_struct, atol=1e-4, rtol=1e-4)

    # (2) Semantic check: the original 3-layer forward. Folding reorders the
    #     matmul chain, so allow for the TPU's default f32-matmul precision.
    w1, b1, w2, b2, w3, b3 = params
    ref_seq = ((x @ w1 + b1) @ w2 + b2) @ w3 + b3
    assert jnp.allclose(out, ref_seq, atol=2e-2, rtol=2e-2)

    print("KERNEL_OK")
</pallas_src>

<mosaic_0001>
module attributes {stable_mosaic.version = 11 : i64} {
  func.func @affine_kernel(%arg0: i32, %arg1: memref<8x128xf32, #tpu.memory_space<vmem>>, %arg2: memref<128x128xf32, #tpu.memory_space<vmem>>, %arg3: memref<8x128xf32, #tpu.memory_space<vmem>>) attributes {dimension_semantics = [#tpu.dimension_semantics<parallel>], iteration_bounds = array<i64: 1>, scalar_prefetch = 0 : i64, scratch_operands = 0 : i64, tpu.core_type = #tpu.core_type<tc>, window_params = [{transform_indices = @transform_0, window_bounds = array<i64: 8, 128>}, {pipeline_mode = #tpu.pipeline_mode<synchronous>, transform_indices = @transform_1, window_bounds = array<i64: 128, 128>}, {transform_indices = @transform_2, window_bounds = array<i64: 8, 128>}]} {
    %c0 = arith.constant 0 : index
    %c0_0 = arith.constant 0 : index
    %0 = vector.load %arg1[%c0, %c0_0] : memref<8x128xf32, #tpu.memory_space<vmem>>, vector<8x128xf32>
    %c0_1 = arith.constant 0 : index
    %c0_2 = arith.constant 0 : index
    %1 = vector.load %arg2[%c0_1, %c0_2] : memref<128x128xf32, #tpu.memory_space<vmem>>, vector<128x128xf32>
    %cst = arith.constant dense<0.000000e+00> : vector<8x128xf32>
    %2 = tpu.matmul %0, %1, %cst {dimension_numbers = #tpu.dot_dimension_numbers<[1], [0], [0], [1], [0, 0, 1, 1], [], []>} : vector<8x128xf32>, vector<128x128xf32>, vector<8x128xf32> -> vector<8x128xf32>
    %c0_3 = arith.constant 0 : index
    %c0_4 = arith.constant 0 : index
    %3 = vector.load %arg3[%c0_3, %c0_4] : memref<8x128xf32, #tpu.memory_space<vmem>>, vector<8x128xf32>
    tpu.vector_store %arg3[%c0_3, %c0_4], %2 {strides = array<i32>} : memref<8x128xf32, #tpu.memory_space<vmem>>, vector<8x128xf32>,
    return
  }
  func.func @transform_0(%arg0: i32) -> (i32, i32) {
    %c0_i32 = arith.constant 0 : i32
    %c0_i32_0 = arith.constant 0 : i32
    return %arg0, %c0_i32 : i32, i32
  }
  func.func @transform_1(%arg0: i32) -> (i32, i32) {
    %c0_i32 = arith.constant 0 : i32
    %c0_i32_0 = arith.constant 0 : i32
    %c0_i32_1 = arith.constant 0 : i32
    return %c0_i32, %c0_i32_0 : i32, i32
  }
  func.func @transform_2(%arg0: i32) -> (i32, i32) {
    %c0_i32 = arith.constant 0 : i32
    %c0_i32_0 = arith.constant 0 : i32
    return %arg0, %c0_i32 : i32, i32
  }
}

</mosaic_0001>

<bundles_post_ra>
// kernel: tpu_custom_call.1
= control target key start
LH: loop header
LB: loop body
LE: loop exit
PB: predicated region body
PF: predicated region fallthrough
CT: control target
= control target key end

     0   :  { %7 = vsyncpa [#allocation3], 0  ;;  %s210_s0 = inlined_call_operand.hbm [shape: f32[8,128], index: 0, kind: input, shape index: {}]   ;;  %s211_s1 = inlined_call_operand.hbm [shape: f32[128,128], index: 1, kind: input, shape index: {}]   ;;  %s212_s2 = inlined_call_operand.hbm [shape: f32[8,128], index: 2, kind: output, shape index: {}]  }
   0x1   :  { %8 = vsyncpa [#allocation6], 0 }
   0x2   :  { %9 = vsyncpa [#allocation4], 0  ;;  %s15_s11 = sshll.u32 %s210_s0, 4  ;;  %s181_s12 = smov [#allocation2]   ;;  %s16_s11 = int_to_ptr.hbm [resolvable:$true] %s15_s11 }
   0x3   :  { %s17_s13 = sshll.u32 %s181_s12, 4  ;;  %s25_s16 = sshll.u32 %s211_s1, 4  ;;  %s18_s13 = int_to_ptr.vmem [resolvable:$true] %s17_s13  ;;  %s26_s16 = int_to_ptr.hbm [resolvable:$true] %s25_s16 }
   0x4   :  { %20 = dma.hbm_to_vmem [thread:$0]  %s16_s11, 128, %s18_s13, [#allocation3]  }
   0x5   :  { %s182_s17 = smov [#allocation5]   ;;  %s183_s19 = smov 128  }
   0x6   :  { %s27_s18 = sshll.u32 %s182_s17, 4  ;;  %s184_s20 = smov 8   ;;  %s28_s18 = int_to_ptr.vmem [resolvable:$true] %s27_s18 }
   0x7   :  { %33 = dma.hbm_to_vmem [thread:$0]  %s26_s16, 2048, %s28_s18, [#allocation6], %s183_s19, %s183_s19, %s184_s20  }
   0x8   :  { %175 = dma.done.wait [#allocation3], 128  }
   0x9   :  { %176 = vsyncadd [#allocation3], 4294967168 }
   0xa   :  { %177 = dma.done.wait [#allocation6], 2048  }
   0xb   :  { %178 = vsyncadd [#allocation6], 4294965248  ;;  %v58_v0 = vld [vmem:[#allocation5 + $0x78] sm:$0xff]  ;;  %v57_v1 = vld [vmem:[#allocation5 + $0x70] sm:$0xff]  ;;  %s185_s0 = smov [#allocation7]   ;;  %s87_s23 = sshll.u32 %s212_s2, 4  ;;  %s88_s23 = int_to_ptr.hbm [resolvable:$true] %s87_s23 }
   0xc   :  { %59 = vmatpush.msra.mxu0 %v58_v0  ;;  %v56_v2 = vld [vmem:[#allocation5 + $0x68] sm:$0xff]  ;;  %v55_v3 = vld [vmem:[#allocation5 + $0x60] sm:$0xff]  ;;  %v54_v4 = vld [vmem:[#allocation5 + $0x58] sm:$0xff]  ;;  %s85_s1 = sshll.u32 %s185_s0, 4  ;;  %s86_s1 = int_to_ptr.vmem [resolvable:$true] %s85_s1 }
   0xd   :  { %v53_v5 = vld [vmem:[#allocation5 + $0x50] sm:$0xff]  ;;  %v52_v6 = vld [vmem:[#allocation5 + $0x48] sm:$0xff]  ;;  %v51_v7 = vld [vmem:[#allocation5 + $0x40] sm:$0xff] }
   0xe   :  { %60 = vmatpush.msra.mxu0 %v57_v1  ;;  %v50_v8 = vld [vmem:[#allocation5 + $0x38] sm:$0xff]  ;;  %v49_v9 = vld [vmem:[#allocation5 + $0x30] sm:$0xff]  ;;  %v48_v10 = vld [vmem:[#allocation5 + $0x28] sm:$0xff] }
   0xf   :  { %v47_v11 = vld [vmem:[#allocation5 + $0x20] sm:$0xff]  ;;  %v46_v12 = vld [vmem:[#allocation5 + $0x18] sm:$0xff]  ;;  %v45_v13 = vld [vmem:[#allocation5 + $0x10] sm:$0xff] }
  0x10   :  { %61 = vmatpush.msra.mxu0 %v56_v2  ;;  %v44_v14 = vld [vmem:[#allocation5 + $0x8] sm:$0xff]  ;;  %v43_v15 = vld [vmem:[#allocation5] sm:$0xff]  ;;  %v42_v16 = vld [vmem:[#allocation2] sm:$0xff] }
  0x12   :  { %62 = vmatpush.msra.mxu0 %v55_v3 }
  0x14   :  { %63 = vmatpush.msra.mxu0 %v54_v4 }
  0x16   :  { %64 = vmatpush.msra.mxu0 %v53_v5 }
  0x18   :  { %65 = vmatpush.msra.mxu0 %v52_v6 }
  0x1a   :  { %66 = vmatpush.msra.mxu0 %v51_v7 }
  0x1c   :  { %67 = vmatpush.msra.mxu0 %v50_v8 }
  0x1e   :  { %68 = vmatpush.msra.mxu0 %v49_v9 }
  0x20   :  { %69 = vmatpush.msra.mxu0 %v48_v10 }
  0x22   :  { %70 = vmatpush.msra.mxu0 %v47_v11 }
  0x24   :  { %71 = vmatpush.msra.mxu0 %v46_v12 }
  0x26   :  { %72 = vmatpush.msra.mxu0 %v45_v13 }
  0x28   :  { %73 = vmatpush.msra.mxu0 %v44_v14 }
  0x2a   :  { %74 = vmatpush.msra.mxu0 %v43_v15 }
  0x2b   :  { %75 = vmatmul.f32.vlgmr.msra.gmra.mxu0 %v42_v16 }
  0xa8   :  { %v76_v17 = vpop.f32.mrf.mxu0 }
  0xa9   :  { %79 = vst [vmem:[#allocation7] sm:$0xff] %v76_v17 }
  0xaa   :  { %90 = dma.vmem_to_hbm [thread:$0]  %s86_s1, 128, %s88_s23, [#allocation4]  }
  0xab   :  { %179 = dma.done.wait [#allocation4], 128  }
  0xac   :  { %180 = vsyncadd [#allocation4], 4294967168 }
  0xad   :  { %95 = vsyncpa [#allocation3], 1 }
  0xae   :  { %96 = vsyncpa [#allocation6], 1 }
  0xaf   :  { %97 = vsyncpa [#allocation4], 1 }

</bundles_post_ra>
